<compile_context>
chip_gen: v7x
topology: tpu7x:2x2x1
jax: 0.10.0
libtpu: 0.0.40
codegen_flags: <defaults>
</compile_context>

<pallas_src>
import functools

import jax
import jax.numpy as jnp
from jax.experimental import pallas as pl
from jax.experimental.pallas import tpu as pltpu

_LANE = 128
_SUB = 8


def _focal_loss_kernel(preds_ref, labels_ref, out_ref, *, gamma, assume_one_hot):
    """Block: preds/labels (1, C, TS, 128) -> out (1, 1, 8, 128) partial sum."""
    x = preds_ref[...].astype(jnp.float32)   # logits  (1, C, TS, 128)
    t = labels_ref[...].astype(jnp.float32)  # targets (1, C, TS, 128)

    # Softmax over the class axis (axis=1).  C is a leading (non-layout) axis,
    # so these reductions are elementwise combines of C vregs on the VPU.
    m = jnp.max(x, axis=1, keepdims=True)             # (1, 1, TS, 128)
    e = jnp.exp(x - m)                                 # 1 exp / element (EUP)
    denom = jnp.sum(e, axis=1, keepdims=True)          # (1, 1, TS, 128)
    inv_denom = pl.reciprocal(denom)                   # 1 recip / position
    p = e * inv_denom                                  # softmax probs
    logp = (x - m) - jnp.log(denom)                    # log-softmax, 1 log / position

    ce = -logp * t                                     # -log(p) * target
    thr = jnp.max(p, axis=1, keepdims=True)            # per-position max prob

    if assume_one_hot:
        # For 0/1 labels, exp(-ce) == p where t==1 and 1 where t==0.  Deriving
        # pt straight from p keeps the pt < thr comparison exact when the
        # target class is the argmax (no exp(log(p)) round-trip) and saves one
        # EUP exp per element.
        pt = jnp.where(t > 0, p, jnp.ones_like(p))
    else:
        # Soft-label path (matches torch pt = exp(-ce) literally).
        pt = jnp.exp(logp * t)

    one_minus_pt = 1.0 - pt
    if isinstance(gamma, int) and 0 <= gamma <= 4:
        # Integer gamma: repeated multiply (float pow lowers to log+exp on EUP).
        w_low = jnp.ones_like(one_minus_pt)
        for _ in range(gamma):
            w_low = w_low * one_minus_pt
    else:
        w_low = one_minus_pt ** gamma
    weight = jnp.where(pt < thr, jnp.ones_like(pt), w_low)
    floss = weight * ce                                # (1, C, TS, 128)

    # Partial reduction with no cross-lane work: elementwise over C, then over
    # TS//8 sublane groups -> a single lane-dense (8, 128) block.
    ts = floss.shape[2]
    fl = jnp.sum(floss, axis=1)                        # (1, TS, 128)
    fl = fl.reshape(ts // _SUB, _SUB, _LANE)
    out_ref[...] = jnp.sum(fl, axis=0)[None, None]     # (1, 1, 8, 128)


def _round_up(x, m):
    return ((x + m - 1) // m) * m


def focal_loss_pallas(preds, labels, batch_size, gamma=1, assume_one_hot=True):
    """Pallas implementation of Focal_Loss.forward(preds, labels, batch_size)."""
    if preds.ndim >= 3:  # (N, C, *spatial) -> (N, C, S)
        N, C = preds.shape[0], preds.shape[1]
        preds = preds.reshape(N, C, -1)
        labels = labels.reshape(N, C, -1)
    N, C, S = preds.shape
    assert batch_size == N, "batch_size must equal preds.shape[0]"

    # Spatial tiling: ts_rows * 128 positions per grid step, sized so each input
    # block is ~1 MiB (multiple of 8 sublanes, capped at 512 rows).  With two
    # inputs double-buffered this stays ~4 MiB of VMEM on every TPU generation.
    itemsize = jnp.dtype(preds.dtype).itemsize
    bytes_per_row = C * _LANE * itemsize
    target_rows = max(_SUB, min(512, (1 << 20) // max(bytes_per_row, 1)))
    rows = -(-S // _LANE)
    ts_rows = min(_round_up(target_rows, _SUB), _round_up(rows, _SUB))
    rows_pad = _round_up(rows, ts_rows)
    num_s_tiles = rows_pad // ts_rows
    s_pad = rows_pad * _LANE

    if s_pad != S:
        # Zero-padded positions have target == 0 -> contribute exactly 0.
        pad = ((0, 0), (0, 0), (0, s_pad - S))
        preds = jnp.pad(preds, pad)
        labels = jnp.pad(labels, pad)

    # Keep the caller's dtype in HBM (no wrapper-side f32 widening).
    preds4 = preds.reshape(N, C, rows_pad, _LANE)
    labels4 = labels.reshape(N, C, rows_pad, _LANE)

    kernel = functools.partial(
        _focal_loss_kernel, gamma=gamma, assume_one_hot=assume_one_hot
    )

    partials = pl.pallas_call(
        kernel,
        out_shape=jax.ShapeDtypeStruct((N, num_s_tiles, _SUB, _LANE), jnp.float32),
        grid_spec=pltpu.PrefetchScalarGridSpec(
            num_scalar_prefetch=0,
            grid=(N, num_s_tiles),
            in_specs=[
                pl.BlockSpec((1, C, ts_rows, _LANE), lambda n, s: (n, 0, s, 0)),
                pl.BlockSpec((1, C, ts_rows, _LANE), lambda n, s: (n, 0, s, 0)),
            ],
            out_specs=pl.BlockSpec((1, 1, _SUB, _LANE), lambda n, s: (n, s, 0, 0)),
        ),
        compiler_params=pltpu.CompilerParams(
            # Every output block is written exactly once -> fully parallel grid
            # (lets v7x shard across both TensorCores; no-op on v5e/v6e).
            dimension_semantics=("parallel", "parallel"),
        ),
    )(preds4, labels4)

    # torch: sum over the class dim, then mean over (N, S) == sum / (N * S).
    return jnp.sum(partials) * (1.0 / float(N * S))


def focal_loss_ref(preds, labels, gamma=1):
    """Pure-JAX reference mirroring PyTorch Focal_Loss.forward.

    NOTE: pt is taken directly from the softmax prob at target positions, which
    equals exp(-ce) exactly for 0/1 labels.  The torch code's pt = exp(log(p))
    round-trip makes the `pt < threshold` comparison at target==argmax
    positions rounding-dependent; using p directly makes that tie deterministic
    (and is what the kernel does).
    """
    N, C = preds.shape[0], preds.shape[1]
    p = jax.nn.softmax(preds.astype(jnp.float32), axis=1)
    y = p.reshape(N, C, -1)
    t = labels.astype(jnp.float32).reshape(N, C, -1)
    ce = -jnp.log(y) * t
    pt = jnp.where(t > 0, y, jnp.ones_like(y))
    thr = jnp.max(y, axis=1, keepdims=True)
    w = jnp.where(pt < thr, jnp.ones_like(pt), (1.0 - pt) ** gamma)
    floss = jnp.sum(w * ce, axis=1)
    return jnp.mean(floss)


if __name__ == "__main__":
    key = jax.random.PRNGKey(0)
    k_logits, k_cls = jax.random.split(key)

    N, C, H, W = 2, 4, 16, 16
    preds = jax.random.normal(k_logits, (N, C, H, W), dtype=jnp.float32)

    # One-hot labels over the channel axis (NCHW).
    classes = jax.random.randint(k_cls, (N, H, W), 0, C)
    labels = jnp.transpose(
        jax.nn.one_hot(classes, C, dtype=jnp.float32), (0, 3, 1, 2)
    )  # (N, C, H, W)

    loss = focal_loss_pallas(preds, labels, batch_size=N, gamma=1)
    loss = jax.block_until_ready(loss)

    ref = focal_loss_ref(preds, labels, gamma=1)
    assert jnp.allclose(loss, ref, rtol=1e-4, atol=1e-5), (loss, ref)

    print("KERNEL_OK")
</pallas_src>

<mosaic_0001>
module attributes {stable_mosaic.version = 11 : i64} {
  func.func @_focal_loss_kernel(%arg0: i32, %arg1: i32, %arg2: memref<1x4x8x128xf32, #tpu.memory_space<vmem>>, %arg3: memref<1x4x8x128xf32, #tpu.memory_space<vmem>>, %arg4: memref<1x1x8x128xf32, #tpu.memory_space<vmem>>) attributes {dimension_semantics = [#tpu.dimension_semantics<parallel>, #tpu.dimension_semantics<parallel>], iteration_bounds = array<i64: 2, 1>, scalar_prefetch = 0 : i64, scratch_operands = 0 : i64, tpu.core_type = #tpu.core_type<tc>, window_params = [{transform_indices = @transform_0, window_bounds = array<i64: 1, 4, 8, 128>}, {transform_indices = @transform_1, window_bounds = array<i64: 1, 4, 8, 128>}, {transform_indices = @transform_2, window_bounds = array<i64: 1, 1, 8, 128>}]} {
    %c0 = arith.constant 0 : index
    %c0_0 = arith.constant 0 : index
    %c0_1 = arith.constant 0 : index
    %c0_2 = arith.constant 0 : index
    %0 = vector.load %arg2[%c0, %c0_0, %c0_1, %c0_2] : memref<1x4x8x128xf32, #tpu.memory_space<vmem>>, vector<1x4x8x128xf32>
    %c0_3 = arith.constant 0 : index
    %c0_4 = arith.constant 0 : index
    %c0_5 = arith.constant 0 : index
    %c0_6 = arith.constant 0 : index
    %1 = vector.load %arg3[%c0_3, %c0_4, %c0_5, %c0_6] : memref<1x4x8x128xf32, #tpu.memory_space<vmem>>, vector<1x4x8x128xf32>
    %cst = arith.constant dense<0xFF800000> : vector<1x8x128xf32>
    %2 = vector.multi_reduction <maximumf>, %0, %cst [1] : vector<1x4x8x128xf32> to vector<1x8x128xf32>
    %3 = vector.shape_cast %2 : vector<1x8x128xf32> to vector<1x1x8x128xf32>
    %4 = vector.broadcast %3 : vector<1x1x8x128xf32> to vector<1x4x8x128xf32>
    %5 = arith.subf %0, %4 : vector<1x4x8x128xf32>
    %6 = math.exp %5 : vector<1x4x8x128xf32>
    %cst_7 = arith.constant dense<0.000000e+00> : vector<1x8x128xf32>
    %7 = vector.multi_reduction <add>, %6, %cst_7 [1] : vector<1x4x8x128xf32> to vector<1x8x128xf32>
    %8 = vector.shape_cast %7 : vector<1x8x128xf32> to vector<1x1x8x128xf32>
    %9 = tpu.reciprocal %8 : vector<1x1x8x128xf32> -> vector<1x1x8x128xf32>
    %10 = vector.broadcast %9 : vector<1x1x8x128xf32> to vector<1x4x8x128xf32>
    %11 = arith.mulf %6, %10 : vector<1x4x8x128xf32>
    %12 = vector.broadcast %3 : vector<1x1x8x128xf32> to vector<1x4x8x128xf32>
    %13 = arith.subf %0, %12 : vector<1x4x8x128xf32>
    %14 = math.log %8 : vector<1x1x8x128xf32>
    %15 = vector.broadcast %14 : vector<1x1x8x128xf32> to vector<1x4x8x128xf32>
    %16 = arith.subf %13, %15 : vector<1x4x8x128xf32>
    %cst_8 = arith.constant 0.000000e+00 : f32
    %17 = vector.broadcast %cst_8 : f32 to vector<1x4x8x128xf32>
    %18 = arith.subf %17, %16 : vector<1x4x8x128xf32>
    %19 = arith.mulf %18, %1 : vector<1x4x8x128xf32>
    %cst_9 = arith.constant dense<0xFF800000> : vector<1x8x128xf32>
    %20 = vector.multi_reduction <maximumf>, %11, %cst_9 [1] : vector<1x4x8x128xf32> to vector<1x8x128xf32>
    %21 = vector.shape_cast %20 : vector<1x8x128xf32> to vector<1x1x8x128xf32>
    %cst_10 = arith.constant 0.000000e+00 : f32
    %22 = vector.broadcast %cst_10 : f32 to vector<1x4x8x128xf32>
    %23 = arith.cmpf ogt, %1, %22 : vector<1x4x8x128xf32>
    %cst_11 = arith.constant 1.000000e+00 : f32
    %24 = vector.broadcast %cst_11 : f32 to vector<1x4x8x128xf32>
    %25 = arith.select %23, %11, %24 : vector<1x4x8x128xi1>, vector<1x4x8x128xf32>
    %cst_12 = arith.constant 1.000000e+00 : f32
    %26 = vector.broadcast %cst_12 : f32 to vector<1x4x8x128xf32>
    %27 = arith.subf %26, %25 : vector<1x4x8x128xf32>
    %cst_13 = arith.constant 1.000000e+00 : f32
    %28 = vector.broadcast %cst_13 : f32 to vector<1x4x8x128xf32>
    %29 = arith.mulf %28, %27 : vector<1x4x8x128xf32>
    %30 = vector.broadcast %21 : vector<1x1x8x128xf32> to vector<1x4x8x128xf32>
    %31 = arith.cmpf olt, %25, %30 : vector<1x4x8x128xf32>
    %cst_14 = arith.constant 1.000000e+00 : f32
    %32 = vector.broadcast %cst_14 : f32 to vector<1x4x8x128xf32>
    %33 = arith.select %31, %32, %29 : vector<1x4x8x128xi1>, vector<1x4x8x128xf32>
    %34 = arith.mulf %33, %19 : vector<1x4x8x128xf32>
    %cst_15 = arith.constant dense<0.000000e+00> : vector<1x8x128xf32>
    %35 = vector.multi_reduction <add>, %34, %cst_15 [1] : vector<1x4x8x128xf32> to vector<1x8x128xf32>
    %cst_16 = arith.constant dense<0.000000e+00> : vector<8x128xf32>
    %36 = vector.multi_reduction <add>, %35, %cst_16 [0] : vector<1x8x128xf32> to vector<8x128xf32>
    %37 = vector.shape_cast %36 : vector<8x128xf32> to vector<1x1x8x128xf32>
    %c0_17 = arith.constant 0 : index
    %c0_18 = arith.constant 0 : index
    %c0_19 = arith.constant 0 : index
    %c0_20 = arith.constant 0 : index
    %38 = vector.load %arg4[%c0_17, %c0_18, %c0_19, %c0_20] : memref<1x1x8x128xf32, #tpu.memory_space<vmem>>, vector<1x1x8x128xf32>
    tpu.vector_store %arg4[%c0_17, %c0_18, %c0_19, %c0_20], %37 {strides = array<i32>} : memref<1x1x8x128xf32, #tpu.memory_space<vmem>>, vector<1x1x8x128xf32>,
    return
  }
  func.func @transform_0(%arg0: i32, %arg1: i32) -> (i32, i32, i32, i32) {
    %c0_i32 = arith.constant 0 : i32
    %c0_i32_0 = arith.constant 0 : i32
    %c0_i32_1 = arith.constant 0 : i32
    return %arg0, %c0_i32, %arg1, %c0_i32_0 : i32, i32, i32, i32
  }
  func.func @transform_1(%arg0: i32, %arg1: i32) -> (i32, i32, i32, i32) {
    %c0_i32 = arith.constant 0 : i32
    %c0_i32_0 = arith.constant 0 : i32
    %c0_i32_1 = arith.constant 0 : i32
    return %arg0, %c0_i32, %arg1, %c0_i32_0 : i32, i32, i32, i32
  }
  func.func @transform_2(%arg0: i32, %arg1: i32) -> (i32, i32, i32, i32) {
    %c0_i32 = arith.constant 0 : i32
    %c0_i32_0 = arith.constant 0 : i32
    %c0_i32_1 = arith.constant 0 : i32
    return %arg0, %arg1, %c0_i32, %c0_i32_0 : i32, i32, i32, i32
  }
}

</mosaic_0001>

<bundles_post_ra>
// kernel: tpu_custom_call.1
= control target key start
LH: loop header
LB: loop body
LE: loop exit
PB: predicated region body
PF: predicated region fallthrough
CT: control target
= control target key end

     0   :  { %7 = vsyncpa [#allocation3], 0  ;;  %s930_s0 = inlined_call_operand.hbm [shape: f32[2,4,8,128], index: 0, kind: input, shape index: {}]   ;;  %s931_s1 = inlined_call_operand.hbm [shape: f32[2,4,8,128], index: 1, kind: input, shape index: {}]   ;;  %s932_s2 = inlined_call_operand.hbm [shape: f32[2,1,8,128], index: 2, kind: output, shape index: {}]  }
   0x1   :  { %9 = vsyncpa [#allocation3 + $0x1], 0 }
   0x2   :  { %10 = vsyncpa [#allocation6], 0 }
   0x3   :  { %12 = vsyncpa [#allocation6 + $0x1], 0 }
   0x4   :  { %13 = vsyncpa [#allocation4], 0 }
   0x5   :  { %15 = vsyncpa [#allocation4 + $0x1], 0  ;;  %s689_s9 = smov 0   ;;  %s691_s10 = smov 0  }
   0x6   :  { %s693_s11 = smov 0   ;;  %s695_s12 = smov 0  }
   0x7   :  { %s697_s13 = smov 0   ;;  %s699_s14 = smov 0  }
   0x8 LB: > { %s420_s15 = sadd.s32 4294967295, %s667_s14   ;;  %s421_s16 = sadd.s32 4294967294, %s667_s14   ;;  %s667_s14 = sphi %s699_s14, %s21_s14   ;;  %s663_s13 = sphi %s697_s13, %s950_s13   ;;  %s659_s12 = sphi %s695_s12, %s949_s12   ;;  %s655_s11 = sphi %s693_s11, %s948_s11   ;;  %s651_s10 = sphi %s691_s10, %s947_s10   ;;  %s647_s9 = sphi %s689_s9, %s946_s9  }
   0x9   : > { %s33_s17 = sadd.s32 1, %s663_s13  ;;  %s42_s18 = sadd.s32 1, %s655_s11 }
   0xa   : > { %p35_p0 = scmp.ge.s32.totalorder %s33_s17, 2  ;;  %p49_p1 = scmp.ne.s32.totalorder %s655_s11, %s651_s10 }
   0xb   : > { %p50_p2 = scmp.eq.s32.totalorder %s667_s14, 0  ;;  %p55_p3 = scmp.ne.s32.totalorder %s651_s10, %s647_s9 }
   0xc   : > { %s952_s17 = smov (%p35_p0, %s33_s17), 0  ;;  %p56_p5 = scmp.eq.s32.totalorder %s420_s15, 0 }
   0xd   : > { %p730_p4 = por %p50_p2, %p49_p1  ;;  %s37_s20 = ssub.s32 %s663_s13, %s952_s17 }
   0xe   : > { %p109_p6 = scmp.eq.s32.totalorder %s420_s15, 1  ;;  %p40_p7 = scmp.eq.s32.totalorder %s37_s20, 0 }
   0xf   : > { %p736_p8 = por %p56_p5, %p55_p3  ;;  %p115_p10 = scmp.eq.s32.totalorder %s421_s16, 1 }
  0x10   : > { %p740_p9 = por %p109_p6, %p49_p1  ;;  %p457_p13 = scmp.lt.s32.totalorder %s667_s14, 2 }
  0x11   : > { %s936_s21 = scalar_select %p736_p8, 1, 0 }
  0x12   : > { %s937_s22 = scalar_select %p740_p9, 1, 0 }
  0x13   : > { %s745_s23 = scalar_select %p40_p7, %s655_s11, %s42_s18  }
  0x14   : > { %p747_p11 = por %p115_p10, %p55_p3  ;;  %s754_s25 = sand.u32 1, %s655_s11  }
  0x15   : > { %s424_s26 = sshll.u32 %s754_s25, 5  ;;  %s438_s27 = sshll.u32 %s663_s13, 9 }
  0x16   : > { %s938_s24 = scalar_select %p747_p11, 1, 0 }
  0x17   : > { %s763_s30 = scalar_lea.hbm %s930_s0, %s438_s27  ;;  %s139_s3 = scalar_lea.vmem [#allocation2], %s424_s26 }
  0x18   : > { %s147_s4 = sshll.u32 %s139_s3, 4  ;;  %p771_p0 = pnand %p457_p13, %p730_p4  ;;  %s767_s4 = int_to_ptr.vmem [resolvable:$true] %s147_s4 }
  0x19   : > { %s136_s6 = scalar_lea.sflag [#allocation3], %s754_s25  ;;  %s521_s7 = scalar_lea.hbm %s763_s30, 512 }
  0x1a   : > { %p522_p2 = scmp.ne.s32.totalorder %s763_s30, %s521_s7  ;;  %p523_p3 = pneg %p771_p0 }
  0x1b   : > { %s526_s16 = scalar_lea.hbm %s930_s0, 1024  ;;  %p527_p4 = scmp.lt.u32.totalorder %s763_s30, %s930_s0 }
  0x1c   : > { %p524_p5 = pnand %p523_p3, %p522_p2  ;;  %p528_p7 = scmp.lt.u32.totalorder %s526_s16, %s521_s7 }
  0x1d   : > { %p530_p13 = scmp.lt.u32.totalorder %s521_s7, %s763_s30 }
  0x1e   : > { %p525_p6 = pneg %p524_p5  ;;  %p529_p10 = por %p528_p7, %p527_p4 }
  0x20   : > { %p531_p12 = por %p530_p13, %p529_p10 }
  0x22   : > { %p532_p1 = pnand %p531_p12, %p525_p6 }
  0x24   : > { %535 = shalt.err (!%p532_p1)
}
  0x25   : > { %s536_s20 = scalar_lea.vmem %s767_s4, 512  ;;  %s669_s28 = smov [#allocation2]  }
  0x26   : > { %p537_p2 = scmp.ne.s32.totalorder %s767_s4, %s536_s20  ;;  %s541_s29 = sshll.u32 %s669_s28, 4  ;;  %s542_s29 = int_to_ptr.vmem [resolvable:$false] %s541_s29 }
  0x27   : > { %s543_s3 = scalar_lea.vmem %s542_s29, 1024  ;;  %p544_p9 = scmp.lt.s32.totalorder %s767_s4, %s542_s29 }
  0x28   : > { %p539_p5 = pnand %p537_p2, %p523_p3  ;;  %p545_p4 = scmp.lt.s32.totalorder %s543_s3, %s536_s20 }
  0x2a   : > { %p540_p11 = pneg %p539_p5  ;;  %p546_p7 = por %p545_p4, %p544_p9 }
  0x2c   : > { %p547_p10 = pnand %p546_p7, %p540_p11 }
  0x2e   : > { %550 = shalt.err (!%p547_p10)
}
  0x2f   : > { %s670_s7 = smov 128   ;;  %s671_s8 = smov 8  }
  0x30   : > { %449 = dma.hbm_to_vmem [thread:$0]  (!%p771_p0), %s763_s30, 512, %s767_s4, %s136_s6, %s670_s7, %s670_s7, %s671_s8  }
  0x31   : > { %p177_p9 = scmp.lt.s32.totalorder %s667_s14, 3  ;;  %s813_s18 = scalar_lea.hbm %s931_s1, %s438_s27 }
  0x32   : > { %p940_p11 = scmp.ge.s32.totalorder %s667_s14, 1  ;;  %s161_s20 = scalar_lea.vmem [#allocation5], %s424_s26 }
  0x33   : > { %s169_s28 = sshll.u32 %s161_s20, 4  ;;  %s158_s30 = scalar_lea.sflag [#allocation6], %s754_s25  ;;  %s823_s28 = int_to_ptr.vmem [resolvable:$true] %s169_s28 }
  0x34   : > { %p817_p12 = pnand %p940_p11, %p177_p9  ;;  %s551_s4 = scalar_lea.hbm %s813_s18, 512 }
  0x35   : > { %p552_p1 = scmp.ne.s32.totalorder %s813_s18, %s551_s4  ;;  %s556_s29 = scalar_lea.hbm %s931_s1, 1024 }
  0x36   : > { %p557_p2 = scmp.lt.u32.totalorder %s813_s18, %s931_s1  ;;  %p558_p5 = scmp.lt.u32.totalorder %s556_s29, %s551_s4 }
  0x37   : > { %p554_p6 = pnand %p552_p1, %p523_p3  ;;  %p560_p7 = scmp.lt.u32.totalorder %s551_s4, %s813_s18 }
  0x38   : > { %p559_p4 = por %p558_p5, %p557_p2 }
  0x39   : > { %p555_p13 = pneg %p554_p6 }
  0x3a   : > { %p561_p10 = por %p560_p7, %p559_p4 }
  0x3c   : > { %p562_p9 = pnand %p561_p10, %p555_p13 }
  0x3e   : > { %565 = shalt.err (!%p562_p9)
}
  0x3f   : > { %s566_s26 = scalar_lea.vmem %s823_s28, 512  ;;  %s672_s16 = smov [#allocation5]  }
  0x40   : > { %p567_p11 = scmp.ne.s32.totalorder %s823_s28, %s566_s26  ;;  %s571_s20 = sshll.u32 %s672_s16, 4  ;;  %s572_s20 = int_to_ptr.vmem [resolvable:$false] %s571_s20 }
  0x41   : > { %s573_s27 = scalar_lea.vmem %s572_s20, 1024  ;;  %p574_p8 = scmp.lt.s32.totalorder %s823_s28, %s572_s20 }
  0x42   : > { %p569_p1 = pnand %p567_p11, %p523_p3  ;;  %p575_p2 = scmp.lt.s32.totalorder %s573_s27, %s566_s26 }
  0x44   : > { %p570_p6 = pneg %p569_p1  ;;  %p576_p5 = por %p575_p2, %p574_p8 }
  0x46   : > { %p577_p4 = pnand %p576_p5, %p570_p6 }
  0x48   : > { %580 = shalt.err (!%p577_p4)
}
  0x49   : > { %452 = dma.hbm_to_vmem [thread:$0]  (!%p771_p0), %s813_s18, 512, %s823_s28, %s158_s30, %s670_s7, %s670_s7, %s671_s8  }
  0x4a   : > { %181 = sbr.rel (%p817_p12) target bundleno = 155 (0x9b), region = 28  ;;  %s857_s4 = sand.u32 (!%p817_p12), 1, %s651_s10  }
  0x4b   : > { %s431_s6 = sshll.u32 (!%p817_p12), %s857_s4, 5  ;;  %s184_s29 = scalar_lea.sflag (!%p817_p12), [#allocation3], %s857_s4 }
  0x4c   : > { %s187_s5 = scalar_lea.vmem (!%p817_p12), [#allocation2], %s431_s6  ;;  %p942_p8 = scmp.ne.s32.totalorder (!%p817_p12), %s936_s21, 0 }
  0x51   : > { %634 = dma.done.wait (%p942_p8), %s184_s29, 512  }
  0x52   : > { %636 = vsyncadd (%p942_p8), %s184_s29, 4294966784  ;;  %s193_s25 = scalar_lea.sflag [#allocation6], %s857_s4  ;;  %s866_s7 = scalar_lea.vmem [#allocation5], %s431_s6 }
  0x53   : > { %638 = dma.done.wait (%p942_p8), %s193_s25, 512  }
  0x54   : > { %640 = vsyncadd (%p942_p8), %s193_s25, 4294966784  ;;  %v222_v0 = vld [vmem:[%s187_s5] sm:$0xff]  ;;  %v223_v1 = vld [vmem:[%s187_s5 + $0x8] sm:$0xff]  ;;  %s433_s21 = sshll.u32 %s857_s4, 3  ;;  %s435_s19 = sshll.u32 %s659_s12, 7 }
  0x55   : > { %v224_v2 = vld [vmem:[%s187_s5 + $0x10] sm:$0xff]  ;;  %v225_v3 = vld [vmem:[%s187_s5 + $0x18] sm:$0xff]  ;;  %v230_v4 = vmax.f32 %v222_v0, %v223_v1  ;;  %v226_v22 = vld [vmem:[%s866_s7] sm:$0xff]  ;;  %s221_s8 = scalar_lea.vmem [#allocation7], %s433_s21  ;;  %s883_s3 = scalar_lea.hbm %s932_s2, %s435_s19 }
  0x56   : > { %v231_v5 = vmax.f32 %v224_v2, %v225_v3  ;;  %v227_v23 = vld [vmem:[%s866_s7 + $0x8] sm:$0xff]  ;;  %v228_v24 = vld [vmem:[%s866_s7 + $0x10] sm:$0xff]  ;;  %v229_v25 = vld [vmem:[%s866_s7 + $0x18] sm:$0xff]  ;;  %vm270_vm0 = vcmp.gt.f32.partialorder %v226_v22, 0.0  ;;  %s314_s18 = sshll.u32 %s221_s8, 4  ;;  %s300_s15 = scalar_lea.sflag [#allocation4], %s857_s4  ;;  %s878_s18 = int_to_ptr.vmem [resolvable:$true] %s314_s18 }
  0x57   : > { %vm271_vm1 = vcmp.gt.f32.partialorder %v227_v23, 0.0  ;;  %vm272_vm2 = vcmp.gt.f32.partialorder %v228_v24, 0.0  ;;  %vm273_vm3 = vcmp.gt.f32.partialorder %v229_v25, 0.0  ;;  %s581_s26 = scalar_lea.vmem %s878_s18, 128  ;;  %p943_p3 = scmp.ne.s32.totalorder %s937_s22, 0 }
  0x58   : > { %v232_v6 = vmax.f32 %v230_v4, %v231_v5  ;;  %p582_p0 = scmp.ne.s32.totalorder %s878_s18, %s581_s26  ;;  %s673_s12 = smov [#allocation7]  }
  0x59   : > { %s585_s16 = sshll.u32 %s673_s12, 4  ;;  %s586_s16 = int_to_ptr.vmem [resolvable:$false] %s585_s16 }
  0x5a   : > { %v233_v7 = vsub.f32 %v222_v0, %v232_v6  ;;  %v234_v8 = vsub.f32 %v223_v1, %v232_v6  ;;  %v235_v9 = vsub.f32 %v224_v2, %v232_v6  ;;  %v236_v10 = vsub.f32 %v225_v3, %v232_v6  ;;  %p583_p12 = pnand %p582_p0, %p943_p3  ;;  %s587_s20 = scalar_lea.vmem %s586_s16, 256 }
  0x5b   : > { %p588_p7 = scmp.lt.s32.totalorder %s878_s18, %s586_s16  ;;  %p589_p10 = scmp.lt.s32.totalorder %s587_s20, %s581_s26 }
  0x5c   : > { %v237_v11 = vmul.f32 1.442695, %v233_v7  ;;  %v239_v12 = vmul.f32 1.442695, %v234_v8  ;;  %v241_v13 = vmul.f32 1.442695, %v235_v9  ;;  %p584_p13 = pneg %p583_p12 }
  0x5d   : > { %v243_v14 = vmul.f32 1.442695, %v236_v10  ;;  %p590_p9 = por %p589_p10, %p588_p7 }
  0x5e   : > { %509 = vpow2.f32 %v237_v11 }
  0x5f   : > { %511 = vpow2.f32 %v239_v12  ;;  %p591_p11 = pnand %p590_p9, %p584_p13 }
  0x60   : > { %513 = vpow2.f32 %v241_v13 }
  0x61   : > { %515 = vpow2.f32 %v243_v14 }
  0x68   : > { %v510_v15 = vpop.eup %509 }
  0x69   : > { %v512_v16 = vpop.eup %511 }
  0x6a   : > { %v514_v17 = vpop.eup %513  ;;  %v245_v18 = vadd.f32 %v512_v16, %v510_v15 }
  0x6b   : > { %v516_v19 = vpop.eup %515 }
  0x6c   : > { %v246_v20 = vadd.f32 %v514_v17, %v245_v18 }
  0x6e   : > { %v247_v21 = vadd.f32 %v516_v19, %v246_v20 }
  0x70   : > { %517 = vrcp.f32 %v247_v21 }
  0x71   : > { %519 = vlog2.f32 %v247_v21 }
  0x7a   : > { %v518_v26 = vpop.eup %517 }
  0x7b   : > { %v520_v27 = vpop.eup %519  ;;  %v249_v28 = vmul.f32 %v518_v26, %v510_v15  ;;  %v250_v29 = vmul.f32 %v518_v26, %v512_v16  ;;  %v251_v30 = vmul.f32 %v518_v26, %v514_v17  ;;  %v252_v31 = vmul.f32 %v518_v26, %v516_v19 }
  0x7c   : > { %v254_v32 = vmul.f32 0.6931472, %v520_v27 }
  0x7d   : > { %v267_v33 = vmax.f32 %v249_v28, %v250_v29  ;;  %v268_v34 = vmax.f32 %v251_v30, %v252_v31  ;;  %v274_v35 = vsel %vm270_vm0, %v249_v28, 1.0  ;;  %v275_v36 = vsel %vm271_vm1, %v250_v29, 1.0 }
  0x7e   : > { %v255_v37 = vsub.f32 %v233_v7, %v254_v32  ;;  %v256_v38 = vsub.f32 %v234_v8, %v254_v32  ;;  %v257_v39 = vsub.f32 %v235_v9, %v254_v32  ;;  %v258_v40 = vsub.f32 %v236_v10, %v254_v32 }
  0x7f   : > { %v269_v41 = vmax.f32 %v267_v33, %v268_v34  ;;  %v276_v42 = vsel %vm272_vm2, %v251_v30, 1.0  ;;  %v277_v43 = vsel %vm273_vm3, %v252_v31, 1.0  ;;  %v278_v44 = vsub.f32 1.0, %v274_v35 }
  0x80   : > { %v259_v45 = vsub.f32 0.0, %v255_v37  ;;  %v260_v46 = vsub.f32 0.0, %v256_v38  ;;  %v261_v47 = vsub.f32 0.0, %v257_v39  ;;  %v262_v48 = vsub.f32 0.0, %v258_v40 }
  0x81   : > { %v279_v49 = vsub.f32 1.0, %v275_v36  ;;  %v280_v50 = vsub.f32 1.0, %v276_v42  ;;  %v281_v51 = vsub.f32 1.0, %v277_v43  ;;  %vm282_vm4 = vcmp.lt.f32.partialorder %v274_v35, %v269_v41 }
  0x82   : > { %v263_v52 = vmul.f32 %v259_v45, %v226_v22  ;;  %v264_v53 = vmul.f32 %v260_v46, %v227_v23  ;;  %v265_v54 = vmul.f32 %v261_v47, %v228_v24  ;;  %v266_v55 = vmul.f32 %v262_v48, %v229_v25 }
  0x83   : > { %vm283_vm5 = vcmp.lt.f32.partialorder %v275_v36, %v269_v41  ;;  %vm284_vm6 = vcmp.lt.f32.partialorder %v276_v42, %v269_v41  ;;  %vm285_vm7 = vcmp.lt.f32.partialorder %v277_v43, %v269_v41  ;;  %v286_v56 = vsel %vm282_vm4, 1.0, %v278_v44 }
  0x84   : > { %v287_v57 = vsel %vm283_vm5, 1.0, %v279_v49  ;;  %v288_v58 = vsel %vm284_vm6, 1.0, %v280_v50  ;;  %v289_v59 = vsel %vm285_vm7, 1.0, %v281_v51  ;;  %v290_v60 = vmul.f32 %v286_v56, %v263_v52 }
  0x85   : > { %v291_v61 = vmul.f32 %v287_v57, %v264_v53  ;;  %v292_v62 = vmul.f32 %v288_v58, %v265_v54  ;;  %v293_v63 = vmul.f32 %v289_v59, %v266_v55 }
  0x87   : > { %v294_v0 = vadd.f32 %v291_v61, %v290_v60 }
  0x89   : > { %v295_v1 = vadd.f32 %v294_v0, %v292_v62 }
  0x8b   : > { %v296_v2 = vadd.f32 %v295_v1, %v293_v63 }
  0x8d   : > { %298 = vst [vmem:[%s221_s8] sm:$0xff] %v296_v2 }
  0x8e   : > { %594 = shalt.err (!%p591_p11)
}
  0x8f   : > { %s595_s27 = scalar_lea.hbm %s883_s3, 128  ;;  %s599_s29 = scalar_lea.hbm %s932_s2, 256 }
  0x90   : > { %p596_p1 = scmp.ne.s32.totalorder %s883_s3, %s595_s27  ;;  %p600_p5 = scmp.lt.u32.totalorder %s883_s3, %s932_s2 }
  0x91   : > { %p601_p4 = scmp.lt.u32.totalorder %s599_s29, %s595_s27  ;;  %p603_p0 = scmp.lt.u32.totalorder %s595_s27, %s883_s3 }
  0x92   : > { %p597_p6 = pnand %p596_p1, %p943_p3 }
  0x93   : > { %p602_p8 = por %p601_p4, %p600_p5 }
  0x94   : > { %p598_p2 = pneg %p597_p6 }
  0x95   : > { %p604_p12 = por %p603_p0, %p602_p8 }
  0x97   : > { %p605_p13 = pnand %p604_p12, %p598_p2 }
  0x99   : > { %608 = shalt.err (!%p605_p13)
}
  0x9a   : > { %444 = dma.vmem_to_hbm [thread:$0]  (%p943_p3), %s878_s18, 128, %s883_s3, %s300_s15  }
  0x9b PF: > { %s326_s7 = sand.u32 1, %s647_s9   ;;  %p944_p7 = scmp.ne.s32.totalorder %s938_s24, 0 }
  0x9c   : > { %p945_p10 = scmp.ge.s32.totalorder %s667_s14, 2  ;;  %s327_s21 = scalar_lea.sflag [#allocation4], %s326_s7 }
  0x9e   : > { %p454_p9 = pnand %p945_p10, %p944_p7 }
  0xa0   : > { %642 = dma.done.wait (!%p454_p9), %s327_s21, 128  }
  0xa1   : > { %644 = vsyncadd (!%p454_p9), %s327_s21, 4294967168  ;;  %s21_s14 = sadd.s32 1, %s667_s14   ;;  %s946_s9 = smov %s651_s10 }
  0xa2   : > { %p18_p11 = scmp.ge.s32.totalorder %s21_s14, 4   ;;  %s947_s10 = smov %s655_s11 }
  0xa3   : > { %s948_s11 = smov %s745_s23  ;;  %s949_s12 = smov %s663_s13 }
  0xa4   : > { %s950_s13 = smov %s952_s17  ;;  %20 = sbr.rel (!%p18_p11) target bundleno = 8 (0x8), region = 86 }
  0xab   :  { %332 = vsyncpa [#allocation3], 1 }
  0xac   :  { %334 = vsyncpa [#allocation3 + $0x1], 1 }
  0xad   :  { %335 = vsyncpa [#allocation6], 1 }
  0xae   :  { %337 = vsyncpa [#allocation6 + $0x1], 1 }
  0xaf   :  { %338 = vsyncpa [#allocation4], 1 }
  0xb0   :  { %340 = vsyncpa [#allocation4 + $0x1], 1 }

</bundles_post_ra>
